<compile_context>
chip_gen: v7x
topology: tpu7x:2x2x1
jax: 0.10.0
libtpu: 0.0.40
codegen_flags: <defaults>
</compile_context>

<pallas_src>
import functools

import jax
import jax.numpy as jnp
from jax.experimental import pallas as pl
from jax.experimental.pallas import tpu as pltpu

LANES = 128
MAX_TILE_ROWS = 2048  # (2048, 128) fp32 = 1 MiB / buffer


def _ema_kernel(omd_ref, shadow_ref, param_ref, out_ref):
    # one_minus_decay is precomputed outside the hot loop; a single f32 scalar in SMEM.
    omd = omd_ref[0]
    s = shadow_ref[...]
    p = param_ref[...]
    # shadow.sub_(one_minus_decay * (shadow - param))  -> 3 VALU ops per vreg (HBM-bound)
    out_ref[...] = s - omd * (s - p)


def _ema_flat(omd, shadow2d, param2d, tile_rows):
    R, L = shadow2d.shape
    assert L == LANES and R % tile_rows == 0
    grid = (R // tile_rows,)
    return pl.pallas_call(
        _ema_kernel,
        out_shape=jax.ShapeDtypeStruct((R, LANES), jnp.float32),
        grid=grid,
        in_specs=[
            pl.BlockSpec(memory_space=pltpu.SMEM),               # one_minus_decay (1,)
            pl.BlockSpec((tile_rows, LANES), lambda i: (i, 0)),  # shadow tile
            pl.BlockSpec((tile_rows, LANES), lambda i: (i, 0)),  # param tile
        ],
        out_specs=pl.BlockSpec((tile_rows, LANES), lambda i: (i, 0)),
        # EMA is an in-place update: reuse the shadow HBM buffer for the output.
        input_output_aliases={1: 0},
        compiler_params=pltpu.CompilerParams(
            dimension_semantics=("parallel",),
        ),
    )(omd, shadow2d, param2d)


def _pack(leaves, tile_rows):
    """Flatten + concat + zero-pad params into a (R, 128) fp32 slab, R % tile_rows == 0."""
    flat = jnp.concatenate(
        [jnp.reshape(l, (-1,)).astype(jnp.float32) for l in leaves]
    )
    total = flat.shape[0]
    block = tile_rows * LANES
    padded = ((total + block - 1) // block) * block
    if padded != total:
        flat = jnp.pad(flat, (0, padded - total))
    return flat.reshape(padded // LANES, LANES)


@functools.partial(jax.jit, static_argnums=(4,), donate_argnums=(0,))
def _ema_step(shadow2d, param_leaves, decay, num_updates, tile_rows):
    """One EMA step fully under jit: pack params, run kernel, bump counter."""
    param2d = _pack(param_leaves, tile_rows)

    # Effective decay (PyTorch increments num_updates before the min()).
    n = num_updates[0]
    nf = (n + 1).astype(jnp.float32)
    eff = jnp.where(
        n >= 0,
        jnp.minimum(decay[0], (1.0 + nf) / (10.0 + nf)),
        decay[0],
    )
    omd = jnp.reshape(1.0 - eff, (1,))

    new_shadow2d = _ema_flat(omd, shadow2d, param2d, tile_rows)
    new_num = jnp.where(num_updates >= 0, num_updates + 1, num_updates)
    return new_shadow2d, new_num


class LitEmaPallas:
    """EMA over a pytree of parameters; shadow state is kept permanently packed
    in the (R, 128) layout so each update is a single Pallas dispatch."""

    def __init__(self, params, decay=0.9999, use_num_updates=True,
                 max_tile_rows=MAX_TILE_ROWS):
        if decay < 0.0 or decay > 1.0:
            raise ValueError("Decay must be between 0 and 1")
        assert max_tile_rows % 8 == 0, "tile rows must be a multiple of 8"
        self.decay = jnp.asarray([decay], dtype=jnp.float32)
        self.num_updates = jnp.asarray(
            [0 if use_num_updates else -1], dtype=jnp.int32
        )

        leaves, treedef = jax.tree_util.tree_flatten(params)
        self._treedef = treedef
        self._shapes = [l.shape for l in leaves]
        self._sizes = [int(l.size) for l in leaves]
        self._total = sum(self._sizes)

        rows = -(-self._total // LANES)          # ceil(total / 128)
        rows = ((rows + 7) // 8) * 8             # sublane multiple of 8
        self._tile_rows = min(max_tile_rows, rows)

        # shadow params = clone of the model params, packed once.
        self.shadow2d = _pack(leaves, self._tile_rows)

    def __call__(self, params):
        """Mirror of LitEma.forward(model): update the shadow buffers in place."""
        leaves = jax.tree_util.tree_leaves(params)
        self.shadow2d, self.num_updates = _ema_step(
            self.shadow2d, leaves, self.decay, self.num_updates, self._tile_rows
        )

    def shadow_params(self):
        """Unpack the shadow state back into the original pytree (consume path only)."""
        flat = self.shadow2d.reshape(-1)[: self._total]
        leaves = []
        off = 0
        for shp, sz in zip(self._shapes, self._sizes):
            leaves.append(flat[off:off + sz].reshape(shp))
            off += sz
        return jax.tree_util.tree_unflatten(self._treedef, leaves)

    # TODO(synk): LitEma.reset()/swap() are pure host-side buffer bookkeeping
    # (copy / pointer swap); no kernel needed, omitted here.


def _reference_ema(shadow_tree, params_tree, decay, num_updates):
    n = num_updates[0]
    nf = (n + 1).astype(jnp.float32)
    eff = jnp.where(
        n >= 0, jnp.minimum(decay[0], (1.0 + nf) / (10.0 + nf)), decay[0]
    )
    omd = 1.0 - eff
    return jax.tree_util.tree_map(lambda s, p: s - omd * (s - p),
                                  shadow_tree, params_tree)


if __name__ == "__main__":
    key = jax.random.PRNGKey(0)
    k1, k2, k3, k4, k5, k6, k7 = jax.random.split(key, 7)

    # ---- test 1: tiny conv+linear style params (single-tile grid) ----------
    params = {
        "convweight": jax.random.normal(k1, (4, 4, 3, 3), dtype=jnp.float32),
        "convbias": jax.random.normal(k2, (4,), dtype=jnp.float32),
        "linweight": jax.random.normal(k3, (32, 16), dtype=jnp.float32),
        "linbias": jax.random.normal(k4, (32,), dtype=jnp.float32),
    }
    ema = LitEmaPallas(params, decay=0.9999, use_num_updates=True)

    # Simulate one optimizer step having changed the live parameters.
    new_params = jax.tree_util.tree_map(
        lambda p, k: p + 0.1 * jax.random.normal(k, p.shape, dtype=jnp.float32),
        params,
        dict(zip(sorted(params.keys()), jax.random.split(k5, len(params)))),
    )

    expected = _reference_ema(ema.shadow_params(), new_params,
                              ema.decay, ema.num_updates)
    ema(new_params)
    got = jax.block_until_ready(ema.shadow_params())
    for name in params:
        assert jnp.allclose(got[name], expected[name], atol=1e-6, rtol=1e-6), name
    assert int(ema.num_updates[0]) == 1

    # ---- test 2: multi-tile grid (small tile cap) over two update steps ----
    params2 = {
        "w": jax.random.normal(k6, (64, 256), dtype=jnp.float32),
        "b": jax.random.normal(k7, (256,), dtype=jnp.float32),
    }
    ema2 = LitEmaPallas(params2, decay=0.999, use_num_updates=True,
                        max_tile_rows=8)

    ref_shadow = jax.tree_util.tree_map(lambda p: p, params2)
    ref_num = jnp.asarray([0], dtype=jnp.int32)
    cur = params2
    for step in range(2):
        kstep = jax.random.fold_in(key, step)
        cur = jax.tree_util.tree_map(
            lambda p, k: p + 0.05 * jax.random.normal(k, p.shape, dtype=jnp.float32),
            cur,
            dict(zip(sorted(cur.keys()), jax.random.split(kstep, len(cur)))),
        )
        ref_shadow = _reference_ema(ref_shadow, cur, ema2.decay, ref_num)
        ref_num = jnp.where(ref_num >= 0, ref_num + 1, ref_num)
        ema2(cur)

    got2 = jax.block_until_ready(ema2.shadow_params())
    for name in params2:
        assert jnp.allclose(got2[name], ref_shadow[name], atol=1e-6, rtol=1e-6), name
    assert int(ema2.num_updates[0]) == 2

    print("KERNEL_OK")
</pallas_src>

<mosaic_0001>
module attributes {stable_mosaic.version = 11 : i64} {
  func.func @_ema_kernel(%arg0: i32, %arg1: memref<1xf32, #tpu.memory_space<smem>>, %arg2: memref<8x128xf32, #tpu.memory_space<vmem>>, %arg3: memref<8x128xf32, #tpu.memory_space<vmem>>, %arg4: memref<8x128xf32, #tpu.memory_space<vmem>>) attributes {dimension_semantics = [#tpu.dimension_semantics<parallel>], iteration_bounds = array<i64: 1>, scalar_prefetch = 0 : i64, scratch_operands = 0 : i64, tpu.core_type = #tpu.core_type<tc>, window_params = [{transform_indices = @transform_0, window_bounds = array<i64: 1>}, {transform_indices = @transform_1, window_bounds = array<i64: 8, 128>}, {transform_indices = @transform_2, window_bounds = array<i64: 8, 128>}, {transform_indices = @transform_3, window_bounds = array<i64: 8, 128>}]} {
    %c0 = arith.constant 0 : index
    %0 = memref.load %arg1[%c0] : memref<1xf32, #tpu.memory_space<smem>>
    %c0_0 = arith.constant 0 : index
    %c0_1 = arith.constant 0 : index
    %1 = vector.load %arg2[%c0_0, %c0_1] : memref<8x128xf32, #tpu.memory_space<vmem>>, vector<8x128xf32>
    %c0_2 = arith.constant 0 : index
    %c0_3 = arith.constant 0 : index
    %2 = vector.load %arg3[%c0_2, %c0_3] : memref<8x128xf32, #tpu.memory_space<vmem>>, vector<8x128xf32>
    %3 = arith.subf %1, %2 : vector<8x128xf32>
    %4 = vector.broadcast %0 : f32 to vector<8x128xf32>
    %5 = arith.mulf %4, %3 : vector<8x128xf32>
    %6 = arith.subf %1, %5 : vector<8x128xf32>
    %c0_4 = arith.constant 0 : index
    %c0_5 = arith.constant 0 : index
    %7 = vector.load %arg4[%c0_4, %c0_5] : memref<8x128xf32, #tpu.memory_space<vmem>>, vector<8x128xf32>
    tpu.vector_store %arg4[%c0_4, %c0_5], %6 {strides = array<i32>} : memref<8x128xf32, #tpu.memory_space<vmem>>, vector<8x128xf32>,
    return
  }
  func.func @transform_0(%arg0: i32) -> i32 {
    %c0_i32 = arith.constant 0 : i32
    %c0_i32_0 = arith.constant 0 : i32
    return %c0_i32 : i32
  }
  func.func @transform_1(%arg0: i32) -> (i32, i32) {
    %c0_i32 = arith.constant 0 : i32
    %c0_i32_0 = arith.constant 0 : i32
    return %arg0, %c0_i32 : i32, i32
  }
  func.func @transform_2(%arg0: i32) -> (i32, i32) {
    %c0_i32 = arith.constant 0 : i32
    %c0_i32_0 = arith.constant 0 : i32
    return %arg0, %c0_i32 : i32, i32
  }
  func.func @transform_3(%arg0: i32) -> (i32, i32) {
    %c0_i32 = arith.constant 0 : i32
    %c0_i32_0 = arith.constant 0 : i32
    return %arg0, %c0_i32 : i32, i32
  }
}

</mosaic_0001>

<bundles_post_ra>
// kernel: _ema_step.1
= control target key start
LH: loop header
LB: loop body
LE: loop exit
PB: predicated region body
PF: predicated region fallthrough
CT: control target
= control target key end

     0   :  { %s59_s0 = inlined_call_operand.<no memory space> [shape: f32[1], index: 0, kind: input, shape index: {}]   ;;  %s60_s1 = inlined_call_operand.vmem [shape: f32[8,128], index: 1, kind: input, shape index: {}, may-alias: {1,3}]   ;;  %s61_s2 = inlined_call_operand.vmem [shape: f32[8,128], index: 2, kind: input, shape index: {}]   ;;  %s62_s3 = inlined_call_operand.vmem [shape: f32[8,128], index: 3, kind: output, shape index: {}, may-alias: {1,3}]  }
   0x1   :  { %v16_v0 = vld [vmem:[%s60_s1] sm:$0xff]  ;;  %v19_v2 = vstv %s59_s0 }
   0x2   :  { %v17_v1 = vld [vmem:[%s61_s2] sm:$0xff] }
   0x3   :  { %v18_v3 = vsub.f32 %v16_v0, %v17_v1 }
   0x5   :  { %v20_v4 = vmul.f32 %v19_v2, %v18_v3 }
   0x7   :  { %v21_v5 = vsub.f32 %v16_v0, %v20_v4 }
   0x9   :  { %22 = vst [vmem:[%s62_s3] sm:$0xff] %v21_v5 }

</bundles_post_ra>
